<compile_context>
chip_gen: v7x
topology: tpu7x:2x2x1
jax: 0.10.0
libtpu: 0.0.40
codegen_flags: <defaults>
</compile_context>

<pallas_src>
import functools

import jax
import jax.numpy as jnp
from jax.experimental import pallas as pl
from jax.experimental.pallas import tpu as pltpu


def _round_up(x, m):
    return (x + m - 1) // m * m


def _patch_embed_kernel(p_ref, w_ref, prm_ref, o_ref, *, eps, hidden_true):
    # p_ref: (TM, K_pad) native dtype; w_ref: (K_pad, hidden_pad) native dtype
    # prm_ref: (3, hidden_pad) f32 packed [bias; gamma; beta]; o_ref: (TM, hidden_pad)
    y = jnp.dot(p_ref[...], w_ref[...], preferred_element_type=jnp.float32)
    prm = prm_ref[...]                       # already f32
    y = y + prm[0:1, :]                      # conv bias

    hp = y.shape[-1]
    if hidden_true == hp:
        mean = jnp.mean(y, axis=-1, keepdims=True)
        centered = y - mean
        var = jnp.mean(centered * centered, axis=-1, keepdims=True)
    else:
        # Padded hidden columns of y are exactly zero (zero-padded weight cols + bias),
        # but LayerNorm statistics must only cover the true hidden width.
        col = jax.lax.broadcasted_iota(jnp.int32, (1, hp), 1)
        mask = (col < hidden_true).astype(jnp.float32)
        inv_n = 1.0 / float(hidden_true)
        mean = jnp.sum(y * mask, axis=-1, keepdims=True) * inv_n
        centered = (y - mean) * mask
        var = jnp.sum(centered * centered, axis=-1, keepdims=True) * inv_n

    out = centered * jax.lax.rsqrt(var + eps) * prm[1:2, :] + prm[2:3, :]
    o_ref[...] = out.astype(o_ref.dtype)


def mamba_patch_embedding(x, conv_w, conv_b, ln_gamma, ln_beta, *, patch_size,
                          eps=1e-5, tile_m=512):
    """x: (B, C, H, W) NCHW (PyTorch convention). Returns ((B, N, hidden), (Hp, Wp))."""
    B, C, H, W = x.shape
    P = patch_size
    hidden = conv_w.shape[0]
    Hp, Wp = H // P, W // P
    N = Hp * Wp
    K = C * P * P
    M = B * N

    # Lane-pad the contraction and output feature dims to multiples of 128.
    K_pad = _round_up(K, 128)
    hidden_pad = _round_up(hidden, 128)

    # --- glue: patchify in plain JAX (pure layout work, no FLOPs) ---
    # (B, C, Hp, P, Wp, P) -> (B, Hp, Wp, C, P, P) -> (B*N, C*P*P); row order (b, ph, pw)
    # matches flatten(2).transpose(1,2); feature order (c, kh, kw) matches Conv2d weights.
    patches = x.reshape(B, C, Hp, P, Wp, P).transpose(0, 2, 4, 1, 3, 5).reshape(M, K)

    # Conv2d weight (hidden, C, P, P) -> (K, hidden); zero-pad K and hidden.
    w_flat = conv_w.reshape(hidden, K).T
    w_p = jnp.pad(w_flat, ((0, K_pad - K), (0, hidden_pad - hidden)))

    # Pack bias / gamma / beta into one f32 (3, hidden_pad) table.
    params = jnp.stack([conv_b, ln_gamma, ln_beta], axis=0).astype(jnp.float32)
    params = jnp.pad(params, ((0, 0), (0, hidden_pad - hidden)))

    # --- tile-size selection + VMEM budget ---
    io_in = jnp.dtype(x.dtype).itemsize
    io_w = jnp.dtype(conv_w.dtype).itemsize
    io_out = jnp.dtype(x.dtype).itemsize

    def _vmem_budget(tm):
        # double-buffered input/output tiles + weight + packed params
        return 2 * (tm * K_pad * io_in + tm * hidden_pad * io_out
                    + K_pad * hidden_pad * io_w + 3 * hidden_pad * 4)

    tile_m_eff = _round_up(min(tile_m, _round_up(M, 8)), 8)
    while tile_m_eff > 8 and _vmem_budget(tile_m_eff) > (32 << 20):
        tile_m_eff = _round_up(tile_m_eff // 2, 8)
    vmem_limit = int(min(64 << 20, max(16 << 20, 2 * _vmem_budget(tile_m_eff))))

    M_pad = _round_up(M, tile_m_eff)
    patches_p = jnp.pad(patches, ((0, M_pad - M), (0, K_pad - K)))

    cost = pl.CostEstimate(
        flops=2 * M_pad * K_pad * hidden_pad,
        transcendentals=M_pad,
        bytes_accessed=(M_pad * K_pad * io_in
                        + K_pad * hidden_pad * io_w
                        + M_pad * hidden_pad * io_out
                        + 3 * hidden_pad * 4),
    )

    out = pl.pallas_call(
        functools.partial(_patch_embed_kernel, eps=eps, hidden_true=hidden),
        out_shape=jax.ShapeDtypeStruct((M_pad, hidden_pad), x.dtype),
        grid_spec=pltpu.PrefetchScalarGridSpec(
            num_scalar_prefetch=0,
            grid=(M_pad // tile_m_eff,),
            in_specs=[
                pl.BlockSpec((tile_m_eff, K_pad), lambda i: (i, 0)),
                pl.BlockSpec((K_pad, hidden_pad), lambda i: (0, 0)),
                pl.BlockSpec((3, hidden_pad), lambda i: (0, 0)),
            ],
            out_specs=pl.BlockSpec((tile_m_eff, hidden_pad), lambda i: (i, 0)),
        ),
        compiler_params=pltpu.CompilerParams(
            dimension_semantics=("parallel",),
            vmem_limit_bytes=vmem_limit,
        ),
        cost_estimate=cost,
    )(patches_p, w_p, params)

    out = out[:M, :hidden].reshape(B, N, hidden)
    return out, (Hp, Wp)


def _reference(x, conv_w, conv_b, ln_gamma, ln_beta, patch_size, eps=1e-5):
    # Pure-JAX reference for sanity checking (conv via patchify + einsum).
    B, C, H, W = x.shape
    P = patch_size
    hidden = conv_w.shape[0]
    Hp, Wp = H // P, W // P
    patches = x.reshape(B, C, Hp, P, Wp, P).transpose(0, 2, 4, 1, 3, 5).reshape(
        B, Hp * Wp, C * P * P)
    y = jnp.einsum("bnk,hk->bnh", patches, conv_w.reshape(hidden, -1)) + conv_b
    mean = jnp.mean(y, axis=-1, keepdims=True)
    var = jnp.mean((y - mean) ** 2, axis=-1, keepdims=True)
    return (y - mean) / jnp.sqrt(var + eps) * ln_gamma + ln_beta


if __name__ == "__main__":
    # Small config: B=2, C=4, H=W=16, patch_size=4, hidden=32  ->  N=16 patches, K=64
    B, C, H, W = 2, 4, 16, 16
    patch_size = 4
    hidden = 32
    K = C * patch_size * patch_size

    key = jax.random.PRNGKey(0)
    kx, kw, kb = jax.random.split(key, 3)

    x = jax.random.normal(kx, (B, C, H, W), dtype=jnp.float32)
    conv_w = jax.random.normal(kw, (hidden, C, patch_size, patch_size),
                               dtype=jnp.float32) * (1.0 / K) ** 0.5
    conv_b = jax.random.normal(kb, (hidden,), dtype=jnp.float32) * 0.01
    ln_gamma = jnp.ones((hidden,), dtype=jnp.float32)
    ln_beta = jnp.zeros((hidden,), dtype=jnp.float32)

    out, (Hp, Wp) = mamba_patch_embedding(
        x, conv_w, conv_b, ln_gamma, ln_beta, patch_size=patch_size)
    out = jax.block_until_ready(out)

    ref = _reference(x, conv_w, conv_b, ln_gamma, ln_beta, patch_size)
    assert out.shape == (B, Hp * Wp, hidden), out.shape
    assert (Hp, Wp) == (H // patch_size, W // patch_size)
    assert jnp.allclose(out, ref, atol=1e-4, rtol=1e-4), float(jnp.max(jnp.abs(out - ref)))

    print("KERNEL_OK")
</pallas_src>

<mosaic_0001>
module attributes {stable_mosaic.version = 11 : i64} {
  func.func @_patch_embed_kernel(%arg0: i32, %arg1: memref<32x128xf32, #tpu.memory_space<vmem>>, %arg2: memref<128x128xf32, #tpu.memory_space<vmem>>, %arg3: memref<3x128xf32, #tpu.memory_space<vmem>>, %arg4: memref<32x128xf32, #tpu.memory_space<vmem>>) attributes {dimension_semantics = [#tpu.dimension_semantics<parallel>], iteration_bounds = array<i64: 1>, scalar_prefetch = 0 : i64, scratch_operands = 0 : i64, tpu.core_type = #tpu.core_type<tc>, window_params = [{transform_indices = @transform_0, window_bounds = array<i64: 32, 128>}, {pipeline_mode = #tpu.pipeline_mode<synchronous>, transform_indices = @transform_1, window_bounds = array<i64: 128, 128>}, {pipeline_mode = #tpu.pipeline_mode<synchronous>, transform_indices = @transform_2, window_bounds = array<i64: 3, 128>}, {transform_indices = @transform_3, window_bounds = array<i64: 32, 128>}]} {
    %c0 = arith.constant 0 : index
    %c0_0 = arith.constant 0 : index
    %0 = vector.load %arg1[%c0, %c0_0] : memref<32x128xf32, #tpu.memory_space<vmem>>, vector<32x128xf32>
    %c0_1 = arith.constant 0 : index
    %c0_2 = arith.constant 0 : index
    %1 = vector.load %arg2[%c0_1, %c0_2] : memref<128x128xf32, #tpu.memory_space<vmem>>, vector<128x128xf32>
    %cst = arith.constant dense<0.000000e+00> : vector<32x128xf32>
    %2 = tpu.matmul %0, %1, %cst {dimension_numbers = #tpu.dot_dimension_numbers<[1], [0], [0], [1], [0, 0, 1, 1], [], []>} : vector<32x128xf32>, vector<128x128xf32>, vector<32x128xf32> -> vector<32x128xf32>
    %c0_3 = arith.constant 0 : index
    %c0_4 = arith.constant 0 : index
    %3 = vector.load %arg3[%c0_3, %c0_4] : memref<3x128xf32, #tpu.memory_space<vmem>>, vector<3x128xf32>
    %4 = vector.extract_strided_slice %3 {offsets = [0, 0], sizes = [1, 128], strides = [1, 1]} : vector<3x128xf32> to vector<1x128xf32>
    %5 = vector.broadcast %4 : vector<1x128xf32> to vector<32x128xf32>
    %6 = arith.addf %2, %5 : vector<32x128xf32>
    %7 = tpu.iota {dimensions = array<i32: 1>} : vector<1x128xi32>
    %c32_i32 = arith.constant 32 : i32
    %8 = vector.broadcast %c32_i32 : i32 to vector<1x128xi32>
    %9 = arith.cmpi slt, %7, %8 : vector<1x128xi32>
    %10 = arith.extui %9 : vector<1x128xi1> to vector<1x128xi32>
    %11 = arith.sitofp %10 : vector<1x128xi32> to vector<1x128xf32>
    %12 = vector.broadcast %11 : vector<1x128xf32> to vector<32x128xf32>
    %13 = arith.mulf %6, %12 : vector<32x128xf32>
    %cst_5 = arith.constant dense<0.000000e+00> : vector<32xf32>
    %14 = vector.multi_reduction <add>, %13, %cst_5 [1] : vector<32x128xf32> to vector<32xf32>
    %15 = vector.shape_cast %14 : vector<32xf32> to vector<32x1xf32>
    %cst_6 = arith.constant 3.125000e-02 : f32
    %16 = vector.broadcast %cst_6 : f32 to vector<32x1xf32>
    %17 = arith.mulf %15, %16 : vector<32x1xf32>
    %18 = vector.broadcast %17 : vector<32x1xf32> to vector<32x128xf32>
    %19 = arith.subf %6, %18 : vector<32x128xf32>
    %20 = vector.broadcast %11 : vector<1x128xf32> to vector<32x128xf32>
    %21 = arith.mulf %19, %20 : vector<32x128xf32>
    %22 = arith.mulf %21, %21 : vector<32x128xf32>
    %cst_7 = arith.constant dense<0.000000e+00> : vector<32xf32>
    %23 = vector.multi_reduction <add>, %22, %cst_7 [1] : vector<32x128xf32> to vector<32xf32>
    %24 = vector.shape_cast %23 : vector<32xf32> to vector<32x1xf32>
    %cst_8 = arith.constant 3.125000e-02 : f32
    %25 = vector.broadcast %cst_8 : f32 to vector<32x1xf32>
    %26 = arith.mulf %24, %25 : vector<32x1xf32>
    %cst_9 = arith.constant 9.99999974E-6 : f32
    %27 = vector.broadcast %cst_9 : f32 to vector<32x1xf32>
    %28 = arith.addf %26, %27 : vector<32x1xf32>
    %29 = math.rsqrt %28 : vector<32x1xf32>
    %30 = vector.broadcast %29 : vector<32x1xf32> to vector<32x128xf32>
    %31 = arith.mulf %21, %30 : vector<32x128xf32>
    %32 = vector.extract_strided_slice %3 {offsets = [1, 0], sizes = [1, 128], strides = [1, 1]} : vector<3x128xf32> to vector<1x128xf32>
    %33 = vector.broadcast %32 : vector<1x128xf32> to vector<32x128xf32>
    %34 = arith.mulf %31, %33 : vector<32x128xf32>
    %35 = vector.extract_strided_slice %3 {offsets = [2, 0], sizes = [1, 128], strides = [1, 1]} : vector<3x128xf32> to vector<1x128xf32>
    %36 = vector.broadcast %35 : vector<1x128xf32> to vector<32x128xf32>
    %37 = arith.addf %34, %36 : vector<32x128xf32>
    %c0_10 = arith.constant 0 : index
    %c0_11 = arith.constant 0 : index
    %38 = vector.load %arg4[%c0_10, %c0_11] : memref<32x128xf32, #tpu.memory_space<vmem>>, vector<32x128xf32>
    tpu.vector_store %arg4[%c0_10, %c0_11], %37 {strides = array<i32>} : memref<32x128xf32, #tpu.memory_space<vmem>>, vector<32x128xf32>,
    return
  }
  func.func @transform_0(%arg0: i32) -> (i32, i32) {
    %c0_i32 = arith.constant 0 : i32
    %c0_i32_0 = arith.constant 0 : i32
    return %arg0, %c0_i32 : i32, i32
  }
  func.func @transform_1(%arg0: i32) -> (i32, i32) {
    %c0_i32 = arith.constant 0 : i32
    %c0_i32_0 = arith.constant 0 : i32
    %c0_i32_1 = arith.constant 0 : i32
    return %c0_i32, %c0_i32_0 : i32, i32
  }
  func.func @transform_2(%arg0: i32) -> (i32, i32) {
    %c0_i32 = arith.constant 0 : i32
    %c0_i32_0 = arith.constant 0 : i32
    %c0_i32_1 = arith.constant 0 : i32
    return %c0_i32, %c0_i32_0 : i32, i32
  }
  func.func @transform_3(%arg0: i32) -> (i32, i32) {
    %c0_i32 = arith.constant 0 : i32
    %c0_i32_0 = arith.constant 0 : i32
    return %arg0, %c0_i32 : i32, i32
  }
}

</mosaic_0001>

<bundles_post_ra>
// kernel: tpu_custom_call.1
= control target key start
LH: loop header
LB: loop body
LE: loop exit
PB: predicated region body
PF: predicated region fallthrough
CT: control target
= control target key end

     0   :  { %8 = vsyncpa [#allocation3], 0  ;;  %s525_s0 = inlined_call_operand.hbm [shape: f32[32,128], index: 0, kind: input, shape index: {}]   ;;  %s526_s1 = inlined_call_operand.hbm [shape: f32[128,128], index: 1, kind: input, shape index: {}]   ;;  %s527_s2 = inlined_call_operand.vmem [shape: f32[3,128], index: 2, kind: input, shape index: {}]   ;;  %s528_s3 = inlined_call_operand.hbm [shape: f32[32,128], index: 3, kind: output, shape index: {}]  }
   0x1   :  { %9 = vsyncpa [#allocation6], 0 }
   0x2   :  { %10 = vsyncpa [#allocation4], 0  ;;  %s441_s12 = smov [#allocation2]   ;;  %s369_s16 = scalar_lea.hbm %s525_s0, 512 }
   0x3   :  { %s16_s13 = sshll.u32 %s441_s12, 4  ;;  %p370_p0 = scmp.ne.s32.totalorder %s525_s0, %s369_s16  ;;  %s17_s13 = int_to_ptr.vmem [resolvable:$true] %s16_s13 }
   0x4   :  { %p373_p1 = scmp.lt.u32.totalorder %s369_s16, %s525_s0 }
   0x6   :  { %p375_p2 = pnand %p373_p1, %p370_p0 }
   0x8   :  { %378 = shalt.err (!%p375_p2)
}
   0x9   :  { %s379_s21 = scalar_lea.vmem %s17_s13, 512  ;;  %p384_p4 = scmp.lt.s32.totalorder %s17_s13, %s17_s13 }
   0xa   :  { %p380_p3 = scmp.ne.s32.totalorder %s17_s13, %s379_s21  ;;  %p385_p5 = scmp.lt.s32.totalorder %s379_s21, %s379_s21 }
   0xc   :  { %p386_p6 = por %p385_p5, %p384_p4 }
   0xe   :  { %p387_p7 = pnand %p386_p6, %p380_p3 }
  0x10   :  { %390 = shalt.err (!%p387_p7)
}
  0x11   :  { %s442_s22 = smov 128   ;;  %s443_s23 = smov 8  }
  0x12   :  { %22 = dma.hbm_to_vmem [thread:$0]  %s525_s0, 512, %s17_s13, [#allocation3], %s442_s22, %s442_s22, %s443_s23  }
  0x13   :  { %s444_s26 = smov [#allocation5]   ;;  %s391_s30 = scalar_lea.hbm %s526_s1, 2048 }
  0x14   :  { %s28_s27 = sshll.u32 %s444_s26, 4  ;;  %p392_p8 = scmp.ne.s32.totalorder %s526_s1, %s391_s30  ;;  %s29_s27 = int_to_ptr.vmem [resolvable:$true] %s28_s27 }
  0x15   :  { %p395_p9 = scmp.lt.u32.totalorder %s391_s30, %s526_s1 }
  0x17   :  { %p397_p10 = pnand %p395_p9, %p392_p8 }
  0x19   :  { %400 = shalt.err (!%p397_p10)
}
  0x1a   :  { %s401_s8 = scalar_lea.vmem %s29_s27, 2048  ;;  %p406_p12 = scmp.lt.s32.totalorder %s29_s27, %s29_s27 }
  0x1b   :  { %p402_p11 = scmp.ne.s32.totalorder %s29_s27, %s401_s8  ;;  %p407_p13 = scmp.lt.s32.totalorder %s401_s8, %s401_s8 }
  0x1d   :  { %p408_p0 = por %p407_p13, %p406_p12 }
  0x1f   :  { %p409_p1 = pnand %p408_p0, %p402_p11 }
  0x21   :  { %412 = shalt.err (!%p409_p1)
}
  0x22   :  { %34 = dma.hbm_to_vmem [thread:$0]  %s526_s1, 2048, %s29_s27, [#allocation6], %s442_s22, %s442_s22, %s443_s23  }
  0x23   :  { %435 = dma.done.wait [#allocation3], 512  }
  0x24   :  { %436 = vsyncadd [#allocation3], 4294966784 }
  0x25   :  { %437 = dma.done.wait [#allocation6], 2048  }
  0x26   :  { %438 = vsyncadd [#allocation6], 4294965248  ;;  %v47_v0 = vld [vmem:[#allocation5] sm:$0xff]  ;;  %v48_v1 = vld [vmem:[#allocation5 + $0x8] sm:$0xff]  ;;  %v64_v28 = vlaneseq  ;;  %v445_v38 = vmov 0.0  }
  0x27   :  { %v49_v2 = vld [vmem:[#allocation5 + $0x10] sm:$0xff]  ;;  %v307_v3 = vpack.c.bf16 %v48_v1, %v47_v0  ;;  %v50_v4 = vld [vmem:[#allocation5 + $0x18] sm:$0xff]  ;;  %v51_v6 = vld [vmem:[#allocation5 + $0x20] sm:$0xff] }
  0x28   :  { %v311_v5 = vpack.c.bf16 %v50_v4, %v49_v2  ;;  %v52_v7 = vld [vmem:[#allocation5 + $0x28] sm:$0xff]  ;;  %v43_v9 = vld [vmem:[#allocation2] sm:$0xff]  ;;  %v45_v10 = vld [vmem:[#allocation2 + $0x10] sm:$0xff]  ;;  %v497_v29 = vshrl.u32 %v64_v28, 7  ;;  %v154_v31 = vand.u32 127, %v64_v28 }
  0x29   :  { %308 = vmatprep.subr.bf16.mxu0 %v307_v3  ;;  %339 = vmatprep.subr.bf16.mxu1 %v307_v3  ;;  %v315_v8 = vpack.c.bf16 %v52_v7, %v51_v6  ;;  %v53_v11 = vld [vmem:[#allocation5 + $0x30] sm:$0xff]  ;;  %v54_v12 = vld [vmem:[#allocation5 + $0x38] sm:$0xff]  ;;  %v55_v14 = vld [vmem:[#allocation5 + $0x40] sm:$0xff] }
  0x2a   :  { %310 = vmatpush3.bf16.msra.mxu0 %v307_v3  ;;  %347 = vmatpush3.bf16.msra.mxu1 %v307_v3  ;;  %v319_v13 = vpack.c.bf16 %v54_v12, %v53_v11  ;;  %v56_v15 = vld [vmem:[#allocation5 + $0x48] sm:$0xff]  ;;  %v57_v17 = vld [vmem:[#allocation5 + $0x50] sm:$0xff]  ;;  %v58_v18 = vld [vmem:[#allocation5 + $0x58] sm:$0xff]  ;;  %v66_v30 = vsub.s32 0, %v497_v29  ;;  %vm155_vm0 = vcmp.lt.s32.totalorder %v154_v31, 32 }
  0x2b   :  { %312 = vmatprep.subr.bf16.mxu0 %v311_v5  ;;  %340 = vmatprep.subr.bf16.mxu1 %v311_v5  ;;  %v323_v16 = vpack.c.bf16 %v56_v15, %v55_v14  ;;  %v327_v19 = vpack.c.bf16 %v58_v18, %v57_v17  ;;  %v59_v20 = vld [vmem:[#allocation5 + $0x60] sm:$0xff]  ;;  %v60_v21 = vld [vmem:[#allocation5 + $0x68] sm:$0xff]  ;;  %v61_v23 = vld [vmem:[#allocation5 + $0x70] sm:$0xff]  ;;  %v248_v39 = vsel %vm155_vm0, 1.0, %v445_v38  ;;  %v212_v15 = vsub.s32 1, %v497_v29 }
  0x2c   :  { %301 = vmatprep.mubr.f32.mxu0 %v43_v9  ;;  %304 = vmatprep.mubr.f32.mxu1 %v45_v10  ;;  %v331_v22 = vpack.c.bf16 %v60_v21, %v59_v20  ;;  %v62_v24 = vld [vmem:[#allocation5 + $0x78] sm:$0xff]  ;;  %v44_v26 = vld [vmem:[#allocation2 + $0x8] sm:$0xff]  ;;  %v503_v32 = vld [vmem:[%s527_s2] sm:$0x7]  ;;  %v220_v17 = vsub.s32 2, %v497_v29  ;;  %s446_s2 = smov [#allocation7]  }
  0x2d   :  { %v335_v25 = vpack.c.bf16 %v62_v24, %v61_v23  ;;  %v46_v27 = vld [vmem:[#allocation2 + $0x18] sm:$0xff]  ;;  %v67_v33 = vrot.slane %v503_v32, %v66_v30  ;;  %v213_v18 = vrot.slane %v503_v32, %v212_v15  ;;  %s235_s11 = sshll.u32 %s446_s2, 4  ;;  %s236_s11 = int_to_ptr.vmem [resolvable:$true] %s235_s11 }
  0x2e   :  { %314 = vmatpush3.bf16.msra.mxu0 %v311_v5  ;;  %348 = vmatpush3.bf16.msra.mxu1 %v311_v5  ;;  %v221_v20 = vrot.slane %v503_v32, %v220_v17  ;;  %s413_s12 = scalar_lea.vmem %s236_s11, 512  ;;  %p418_p3 = scmp.lt.s32.totalorder %s236_s11, %s236_s11 }
  0x2f   :  { %316 = vmatprep.subr.bf16.mxu0 %v315_v8  ;;  %341 = vmatprep.subr.bf16.mxu1 %v315_v8  ;;  %p414_p2 = scmp.ne.s32.totalorder %s236_s11, %s413_s12  ;;  %p419_p4 = scmp.lt.s32.totalorder %s413_s12, %s413_s12 }
  0x31   :  { %p420_p5 = por %p419_p4, %p418_p3 }
  0x32   :  { %318 = vmatpush3.bf16.msra.mxu0 %v315_v8  ;;  %349 = vmatpush3.bf16.msra.mxu1 %v315_v8 }
  0x33   :  { %320 = vmatprep.subr.bf16.mxu0 %v319_v13  ;;  %342 = vmatprep.subr.bf16.mxu1 %v319_v13  ;;  %p421_p6 = pnand %p420_p5, %p414_p2 }
  0x36   :  { %322 = vmatpush3.bf16.msra.mxu0 %v319_v13  ;;  %350 = vmatpush3.bf16.msra.mxu1 %v319_v13 }
  0x37   :  { %324 = vmatprep.subr.bf16.mxu0 %v323_v16  ;;  %343 = vmatprep.subr.bf16.mxu1 %v323_v16 }
  0x3a   :  { %326 = vmatpush3.bf16.msra.mxu0 %v323_v16  ;;  %351 = vmatpush3.bf16.msra.mxu1 %v323_v16 }
  0x3b   :  { %328 = vmatprep.subr.bf16.mxu0 %v327_v19  ;;  %344 = vmatprep.subr.bf16.mxu1 %v327_v19 }
  0x3e   :  { %330 = vmatpush3.bf16.msra.mxu0 %v327_v19  ;;  %352 = vmatpush3.bf16.msra.mxu1 %v327_v19 }
  0x3f   :  { %332 = vmatprep.subr.bf16.mxu0 %v331_v22  ;;  %345 = vmatprep.subr.bf16.mxu1 %v331_v22 }
  0x42   :  { %334 = vmatpush3.bf16.msra.mxu0 %v331_v22  ;;  %353 = vmatpush3.bf16.msra.mxu1 %v331_v22 }
  0x43   :  { %336 = vmatprep.subr.bf16.mxu0 %v335_v25  ;;  %346 = vmatprep.subr.bf16.mxu1 %v335_v25 }
  0x46   :  { %338 = vmatpush3.bf16.msra.mxu0 %v335_v25  ;;  %354 = vmatpush3.bf16.msra.mxu1 %v335_v25 }
  0x49   :  { %302 = vmatmul.mubr.f32.vlgmr.msra.gmra.mrb[0].mxu0 %v44_v26  ;;  %305 = vmatmul.mubr.f32.vlgmr.msra.gmra.mrb[0].mxu1 %v46_v27 }
 0x11c   :  { %v303_v34 = vpop.f32.mrb[0].mxu0  ;;  %v306_v35 = vpop.f32.mrb[0].mxu1 }
 0x11d   :  { %v134_v36 = vpop.f32.mrb[1].mxu0  ;;  %v144_v37 = vpop.f32.mrb[1].mxu1  ;;  %v150_v40 = vadd.f32 %v306_v35, %v67_v33  ;;  %v140_v43 = vadd.f32 %v303_v34, %v67_v33 }
 0x11e   :  { %v135_v41 = vadd.f32 %v134_v36, %v67_v33  ;;  %v145_v42 = vadd.f32 %v144_v37, %v67_v33 }
 0x11f   :  { %v161_v46 = vmul.f32 %v248_v39, %v150_v40  ;;  %v159_v47 = vmul.f32 %v248_v39, %v140_v43 }
 0x120   :  { %v160_v44 = vmul.f32 %v248_v39, %v145_v42  ;;  %v158_v45 = vmul.f32 %v248_v39, %v135_v41 }
 0x122   :  { %166 = vadd.xlane.f32.xlu1 %v160_v44  ;;  %162 = vadd.xlane.f32.xlu0 %v158_v45 }
 0x126   :  { %168 = vadd.xlane.f32.xlu1 %v161_v46  ;;  %164 = vadd.xlane.f32.xlu0 %v159_v47 }
 0x1af   :  { %v167_v48 = vpop.xlane.xlu1 %166  ;;  %v163_v49 = vpop.xlane.xlu0 %162 }
 0x1b0   :  { %v172_v50 = vmul.f32 0.03125, %v167_v48  ;;  %v170_v51 = vmul.f32 0.03125, %v163_v49 }
 0x1b2   :  { %v176_v52 = vsub.f32 %v145_v42, %v172_v50  ;;  %v174_v53 = vsub.f32 %v135_v41, %v170_v51 }
 0x1b3   :  { %v169_v54 = vpop.xlane.xlu1 %168  ;;  %v165_v55 = vpop.xlane.xlu0 %164 }
 0x1b4   :  { %v173_v56 = vmul.f32 0.03125, %v169_v54  ;;  %v171_v57 = vmul.f32 0.03125, %v165_v55  ;;  %v178_v58 = vmul.f32 %v248_v39, %v174_v53  ;;  %v180_v62 = vmul.f32 %v248_v39, %v176_v52 }
 0x1b6   :  { %v177_v59 = vsub.f32 %v150_v40, %v173_v56  ;;  %v175_v60 = vsub.f32 %v140_v43, %v171_v57  ;;  %v182_v61 = vmul.f32 %v178_v58, %v178_v58  ;;  %v184_v0 = vmul.f32 %v180_v62, %v180_v62 }
 0x1b8   :  { %186 = vadd.xlane.f32.xlu0 %v182_v61  ;;  %v179_v63 = vmul.f32 %v248_v39, %v175_v60  ;;  %v181_v2 = vmul.f32 %v248_v39, %v177_v59 }
 0x1ba   :  { %v183_v1 = vmul.f32 %v179_v63, %v179_v63  ;;  %v185_v3 = vmul.f32 %v181_v2, %v181_v2 }
 0x1bc   :  { %190 = vadd.xlane.f32.xlu0 %v184_v0  ;;  %188 = vadd.xlane.f32.xlu1 %v183_v1 }
 0x1c0   :  { %192 = vadd.xlane.f32.xlu1 %v185_v3 }
 0x245   :  { %v187_v4 = vpop.xlane.xlu0 %186 }
 0x246   :  { %v194_v5 = vmul.f32 0.03125, %v187_v4 }
 0x248   :  { %v198_v6 = vadd.f32 1e-05, %v194_v5 }
 0x249   :  { %v189_v7 = vpop.xlane.xlu1 %188  ;;  %v191_v8 = vpop.xlane.xlu0 %190 }
 0x24a   :  { %361 = vrsqrt.f32 %v198_v6  ;;  %v195_v9 = vmul.f32 0.03125, %v189_v7  ;;  %v196_v10 = vmul.f32 0.03125, %v191_v8 }
 0x24c   :  { %v199_v11 = vadd.f32 1e-05, %v195_v9  ;;  %v200_v12 = vadd.f32 1e-05, %v196_v10 }
 0x24d   :  { %v193_v13 = vpop.xlane.xlu1 %192 }
 0x24e   :  { %363 = vrsqrt.f32 %v199_v11  ;;  %v197_v14 = vmul.f32 0.03125, %v193_v13 }
 0x24f   :  { %365 = vrsqrt.f32 %v200_v12 }
 0x250   :  { %v201_v16 = vadd.f32 1e-05, %v197_v14 }
 0x252   :  { %367 = vrsqrt.f32 %v201_v16 }
 0x254   :  { %v362_v19 = vpop.eup %361 }
 0x255   :  { %v206_v21 = vmul.f32 %v362_v19, %v178_v58 }
 0x257   :  { %v214_v22 = vmul.f32 %v213_v18, %v206_v21 }
 0x258   :  { %v364_v23 = vpop.eup %363 }
 0x259   :  { %v366_v24 = vpop.eup %365  ;;  %v207_v25 = vmul.f32 %v364_v23, %v179_v63  ;;  %v222_v26 = vadd.f32 %v221_v20, %v214_v22 }
 0x25a   :  { %v208_v27 = vmul.f32 %v366_v24, %v180_v62 }
 0x25b   :  { %v215_v28 = vmul.f32 %v213_v18, %v207_v25  ;;  %226 = vst [vmem:[#allocation7] sm:$0xff] %v222_v26 }
 0x25c   :  { %v368_v30 = vpop.eup %367  ;;  %v216_v31 = vmul.f32 %v213_v18, %v208_v27 }
 0x25d   :  { %v209_v33 = vmul.f32 %v368_v30, %v181_v2  ;;  %v223_v34 = vadd.f32 %v221_v20, %v215_v28 }
 0x25e   :  { %v224_v29 = vadd.f32 %v221_v20, %v216_v31 }
 0x25f   :  { %v217_v35 = vmul.f32 %v213_v18, %v209_v33  ;;  %227 = vst [vmem:[#allocation7 + $0x8] sm:$0xff] %v223_v34 }
 0x260   :  { %228 = vst [vmem:[#allocation7 + $0x10] sm:$0xff] %v224_v29 }
 0x261   :  { %v225_v32 = vadd.f32 %v221_v20, %v217_v35 }
 0x263   :  { %229 = vst [vmem:[#allocation7 + $0x18] sm:$0xff] %v225_v32 }
 0x264   :  { %424 = shalt.err (!%p421_p6)
}
 0x265   :  { %s425_s15 = scalar_lea.hbm %s528_s3, 512 }
 0x266   :  { %p426_p7 = scmp.ne.s32.totalorder %s528_s3, %s425_s15  ;;  %p429_p8 = scmp.lt.u32.totalorder %s425_s15, %s528_s3 }
 0x268   :  { %p431_p9 = pnand %p429_p8, %p426_p7 }
 0x26a   :  { %434 = shalt.err (!%p431_p9)
}
 0x26b   :  { %241 = dma.vmem_to_hbm [thread:$0]  %s236_s11, 512, %s528_s3, [#allocation4], %s442_s22, %s442_s22, %s443_s23  }
 0x26c   :  { %439 = dma.done.wait [#allocation4], 512  }
 0x26d   :  { %440 = vsyncadd [#allocation4], 4294966784 }
 0x26e   :  { %245 = vsyncpa [#allocation3], 1 }
 0x26f   :  { %246 = vsyncpa [#allocation6], 1 }
 0x270   :  { %247 = vsyncpa [#allocation4], 1 }

</bundles_post_ra>
